<compile_context>
chip_gen: v7x
topology: tpu7x:2x2x1
jax: 0.10.0
libtpu: 0.0.40
codegen_flags: <defaults>
</compile_context>

<pallas_src>
import functools
import math

import jax
import jax.numpy as jnp
from jax import lax
from jax.experimental import pallas as pl
from jax.experimental.pallas import tpu as pltpu


def _round_up(x, m):
    return (x + m - 1) // m * m


# ---------------------------------------------------------------------------
# Kernel 1: tiled linear  out = act(x @ W + b)   (K-reduction accumulator)
# ---------------------------------------------------------------------------
def _linear_kernel(x_ref, w_ref, b_ref, o_ref, acc_ref, *, activation):
    k = pl.program_id(2)

    @pl.when(k == 0)
    def _():
        acc_ref[...] = jnp.zeros_like(acc_ref)

    acc_ref[...] += jnp.dot(
        x_ref[...], w_ref[...], preferred_element_type=jnp.float32
    )

    @pl.when(k == pl.num_programs(2) - 1)
    def _():
        out = acc_ref[...] + b_ref[...].astype(jnp.float32)
        if activation == "relu":
            out = jnp.maximum(out, 0.0)
        o_ref[...] = out.astype(o_ref.dtype)


def pallas_linear(x2d, w, b, *, activation=None, tm=256, tn=256, tk=512):
    """x2d: (M, K), w: (K, N), b: (N,) -> (M, N), optional fused ReLU."""
    M, K = x2d.shape
    Kw, N = w.shape
    assert Kw == K

    # Clamp tiles to the (padded) problem size, keeping (8,128) alignment.
    # Tiles of <= 256x512 f32 stay far below the 32 MiB scoped-VMEM default
    # even on v7x (64 MiB physical per TC).
    tm = min(tm, _round_up(M, 8))
    tn = min(tn, _round_up(N, 128))
    tk = min(tk, _round_up(K, 128))
    Mp, Kp, Np = _round_up(M, tm), _round_up(K, tk), _round_up(N, tn)

    xp = x2d if (Mp, Kp) == (M, K) else jnp.pad(x2d, ((0, Mp - M), (0, Kp - K)))
    wp = w if (Kp, Np) == (K, N) else jnp.pad(w, ((0, Kp - K), (0, Np - N)))
    bp = (b if Np == N else jnp.pad(b, (0, Np - N))).reshape(1, Np)

    grid = (Mp // tm, Np // tn, Kp // tk)
    flops = 2 * Mp * Np * Kp
    bytes_accessed = 4 * (
        Mp * Kp * (Np // tn) + Kp * Np * (Mp // tm) + Mp * Np + Np
    )

    out = pl.pallas_call(
        functools.partial(_linear_kernel, activation=activation),
        out_shape=jax.ShapeDtypeStruct((Mp, Np), x2d.dtype),
        grid_spec=pltpu.PrefetchScalarGridSpec(
            num_scalar_prefetch=0,
            grid=grid,
            in_specs=[
                pl.BlockSpec((tm, tk), lambda i, j, k: (i, k)),
                pl.BlockSpec((tk, tn), lambda i, j, k: (k, j)),
                pl.BlockSpec((1, tn), lambda i, j, k: (0, j)),
            ],
            out_specs=pl.BlockSpec((tm, tn), lambda i, j, k: (i, j)),
            scratch_shapes=[pltpu.VMEM((tm, tn), jnp.float32)],
        ),
        compiler_params=pltpu.CompilerParams(
            dimension_semantics=("parallel", "parallel", "arbitrary"),
            vmem_limit_bytes=32 * 1024 * 1024,
        ),
        cost_estimate=pl.CostEstimate(
            flops=flops, transcendentals=0, bytes_accessed=bytes_accessed
        ),
    )(xp, wp, bp)

    if (Mp, Np) != (M, N):
        out = out[:M, :N]
    return out


# ---------------------------------------------------------------------------
# Kernel 2: multi-head attention for one batch element per grid step.
# Consumes the (T, 3D) qkv slab directly (no HBM transposes), writes a single
# lane-dense (T, D) slab in (B, T, D) layout.
# NOTE: NO causal mask — faithfully reproduces the discarded masked_fill in
#       the PyTorch reference.
# ---------------------------------------------------------------------------
def _attn_kernel(qkv_ref, o_ref, *, n_heads, scale):
    T, D3 = qkv_ref.shape
    D = D3 // 3
    hd = D // n_heads

    qkv = qkv_ref[...]
    head_outs = []
    for h in range(n_heads):  # static unroll over heads
        q = qkv[:, h * hd:(h + 1) * hd] * scale          # scale folded into q
        k = qkv[:, D + h * hd:D + (h + 1) * hd]
        v = qkv[:, 2 * D + h * hd:2 * D + (h + 1) * hd]

        # Contract last dims of q and k (no materialized k.T).
        s = lax.dot_general(
            q, k, (((1,), (1,)), ((), ())),
            preferred_element_type=jnp.float32,
        )                                                # (T, T)
        m = jnp.max(s, axis=-1, keepdims=True)
        e = jnp.exp(s - m)
        p = e * pl.reciprocal(jnp.sum(e, axis=-1, keepdims=True), approx=True)
        head_outs.append(
            jnp.dot(p, v, preferred_element_type=jnp.float32)  # (T, hd)
        )

    # Single lane-dense store of the whole (T, D) slab.
    o_ref[...] = jnp.concatenate(head_outs, axis=-1).astype(o_ref.dtype)


def pallas_attention(qkv, n_heads):
    """qkv: (B, T, 3D) -> attention output (B, T, D)."""
    B, T, D3 = qkv.shape
    assert D3 % 3 == 0
    D = D3 // 3
    assert D % n_heads == 0
    scale = 1.0 / math.sqrt(D // n_heads)

    return pl.pallas_call(
        functools.partial(_attn_kernel, n_heads=n_heads, scale=scale),
        out_shape=jax.ShapeDtypeStruct((B, T, D), qkv.dtype),
        grid=(B,),
        in_specs=[pl.BlockSpec((None, T, D3), lambda b: (b, 0, 0))],
        out_specs=pl.BlockSpec((None, T, D), lambda b: (b, 0, 0)),
        compiler_params=pltpu.CompilerParams(
            dimension_semantics=("parallel",)
        ),
    )(qkv)


# ---------------------------------------------------------------------------
# Kernel 3: LayerNorm over the last dim (rows tiled across the grid).
# ---------------------------------------------------------------------------
def _layernorm_kernel(x_ref, g_ref, b_ref, o_ref, *, eps):
    x = x_ref[...].astype(jnp.float32)
    mean = jnp.mean(x, axis=-1, keepdims=True)
    xc = x - mean
    var = jnp.mean(xc * xc, axis=-1, keepdims=True)
    inv = lax.rsqrt(var + eps)
    o_ref[...] = (xc * inv * g_ref[...] + b_ref[...]).astype(o_ref.dtype)


def pallas_layernorm(x2d, gamma, beta, *, eps=1e-5, tm=256):
    M, D = x2d.shape
    tm = min(tm, _round_up(M, 8))
    Mp = _round_up(M, tm)
    xp = x2d if Mp == M else jnp.pad(x2d, ((0, Mp - M), (0, 0)))

    out = pl.pallas_call(
        functools.partial(_layernorm_kernel, eps=eps),
        out_shape=jax.ShapeDtypeStruct((Mp, D), x2d.dtype),
        grid=(Mp // tm,),
        in_specs=[
            pl.BlockSpec((tm, D), lambda i: (i, 0)),
            pl.BlockSpec((1, D), lambda i: (0, 0)),
            pl.BlockSpec((1, D), lambda i: (0, 0)),
        ],
        out_specs=pl.BlockSpec((tm, D), lambda i: (i, 0)),
        compiler_params=pltpu.CompilerParams(
            dimension_semantics=("parallel",)
        ),
    )(xp, gamma.reshape(1, D), beta.reshape(1, D))

    return out if Mp == M else out[:M]


# ---------------------------------------------------------------------------
# GPT forward (Pallas kernels for linears / attention / layernorm;
# embedding gather, residual adds and cross-entropy are plain-JAX glue).
# ---------------------------------------------------------------------------
def gpt_forward(params, tokens, target, n_heads):
    B, T = tokens.shape
    V, D = params["tok_emb"].shape

    te = params["tok_emb"][tokens]                 # (B, T, D) gather (JAX glue)
    pe = params["pos_emb"][:T][None]               # (1, T, D)
    h = te + pe

    for blk in params["blocks"]:
        x_in = h                                   # block input (kept for BOTH residuals)
        hn = pallas_layernorm(x_in.reshape(B * T, D), blk["ln1_g"], blk["ln1_b"])
        qkv = pallas_linear(hn, blk["w_qkv"], blk["b_qkv"]).reshape(B, T, 3 * D)
        att = pallas_attention(qkv, n_heads)       # (B, T, D), no HBM transposes
        att = pallas_linear(
            att.reshape(B * T, D), blk["w_attn_out"], blk["b_attn_out"]
        ).reshape(B, T, D)
        h2 = x_in + att

        hn = pallas_layernorm(h2.reshape(B * T, D), blk["ln2_g"], blk["ln2_b"])
        ff = pallas_linear(hn, blk["w_mlp1"], blk["b_mlp1"], activation="relu")
        ff = pallas_linear(ff, blk["w_mlp2"], blk["b_mlp2"]).reshape(B, T, D)
        h = x_in + ff                              # reference adds the ORIGINAL x

    h = pallas_layernorm(h.reshape(B * T, D), params["ln_g"], params["ln_b"])
    logits = pallas_linear(h, params["w_head"], params["b_head"]).reshape(B, T, V)

    # Per-position cross entropy (matches the reference one-hot formulation).
    logp = jax.nn.log_softmax(logits, axis=-1)
    loss = -jnp.take_along_axis(logp, target[..., None], axis=-1)[..., 0]
    return logits, loss


# ---------------------------------------------------------------------------
# Deterministic parameter init (mimics nn.Linear / nn.LayerNorm / randn embs).
# ---------------------------------------------------------------------------
def _init_linear(key, fan_in, fan_out):
    k1, k2 = jax.random.split(key)
    bound = 1.0 / math.sqrt(fan_in)
    w = jax.random.uniform(k1, (fan_in, fan_out), jnp.float32, -bound, bound)
    b = jax.random.uniform(k2, (fan_out,), jnp.float32, -bound, bound)
    return w, b


def init_gpt_params(key, vocab_size, dim, n_layers, seq_len):
    keys = jax.random.split(key, 3 + n_layers)
    params = {
        "tok_emb": jax.random.normal(keys[0], (vocab_size, dim), jnp.float32),
        "pos_emb": jax.random.normal(keys[1], (seq_len, dim), jnp.float32),
        "ln_g": jnp.ones((dim,), jnp.float32),
        "ln_b": jnp.zeros((dim,), jnp.float32),
        "blocks": [],
    }
    w_head, b_head = _init_linear(keys[2], dim, vocab_size)
    params["w_head"], params["b_head"] = w_head, b_head

    for li in range(n_layers):
        bk = jax.random.split(keys[3 + li], 4)
        w_qkv, b_qkv = _init_linear(bk[0], dim, 3 * dim)
        w_ao, b_ao = _init_linear(bk[1], dim, dim)
        w_m1, b_m1 = _init_linear(bk[2], dim, 4 * dim)
        w_m2, b_m2 = _init_linear(bk[3], 4 * dim, dim)
        params["blocks"].append({
            "ln1_g": jnp.ones((dim,), jnp.float32),
            "ln1_b": jnp.zeros((dim,), jnp.float32),
            "ln2_g": jnp.ones((dim,), jnp.float32),
            "ln2_b": jnp.zeros((dim,), jnp.float32),
            "w_qkv": w_qkv, "b_qkv": b_qkv,
            "w_attn_out": w_ao, "b_attn_out": b_ao,
            "w_mlp1": w_m1, "b_mlp1": b_m1,
            "w_mlp2": w_m2, "b_mlp2": b_m2,
        })
    return params


# ---------------------------------------------------------------------------
# Pure-JAX reference (same semantics: no mask, same residual structure).
# ---------------------------------------------------------------------------
def _ln_ref(x, g, b, eps=1e-5):
    m = x.mean(-1, keepdims=True)
    v = ((x - m) ** 2).mean(-1, keepdims=True)
    return (x - m) / jnp.sqrt(v + eps) * g + b


def gpt_reference(params, tokens, target, n_heads):
    B, T = tokens.shape
    V, D = params["tok_emb"].shape
    hd = D // n_heads
    h = params["tok_emb"][tokens] + params["pos_emb"][:T][None]
    for blk in params["blocks"]:
        x_in = h
        hn = _ln_ref(x_in, blk["ln1_g"], blk["ln1_b"])
        qkv = hn @ blk["w_qkv"] + blk["b_qkv"]
        q, k, v = jnp.split(qkv, 3, axis=-1)
        q = q.reshape(B, T, n_heads, hd).transpose(0, 2, 1, 3)
        k = k.reshape(B, T, n_heads, hd).transpose(0, 2, 1, 3)
        v = v.reshape(B, T, n_heads, hd).transpose(0, 2, 1, 3)
        s = jnp.einsum("bhqd,bhkd->bhqk", q, k) / math.sqrt(hd)  # no mask
        a = jax.nn.softmax(s, axis=-1)
        att = jnp.einsum("bhqk,bhkd->bhqd", a, v).transpose(0, 2, 1, 3)
        att = att.reshape(B, T, D) @ blk["w_attn_out"] + blk["b_attn_out"]
        h2 = x_in + att
        hn = _ln_ref(h2, blk["ln2_g"], blk["ln2_b"])
        ff = jnp.maximum(hn @ blk["w_mlp1"] + blk["b_mlp1"], 0.0)
        ff = ff @ blk["w_mlp2"] + blk["b_mlp2"]
        h = x_in + ff
    h = _ln_ref(h, params["ln_g"], params["ln_b"])
    logits = h @ params["w_head"] + params["b_head"]
    logp = jax.nn.log_softmax(logits, axis=-1)
    loss = -jnp.take_along_axis(logp, target[..., None], axis=-1)[..., 0]
    return logits, loss


if __name__ == "__main__":
    B, T, D, H = 2, 8, 32, 4          # batch=2, seq=8, dim=32, heads=4
    VOCAB, N_LAYERS, SEQ_LEN = 64, 2, 16

    key = jax.random.PRNGKey(0)
    kp, kt, kl = jax.random.split(key, 3)

    params = init_gpt_params(kp, VOCAB, D, N_LAYERS, SEQ_LEN)
    tokens = jax.random.randint(kt, (B, T), 0, VOCAB, dtype=jnp.int32)
    target = jax.random.randint(kl, (B, T), 0, VOCAB, dtype=jnp.int32)

    logits, loss = gpt_forward(params, tokens, target, H)
    jax.block_until_ready((logits, loss))

    logits_ref, loss_ref = gpt_reference(params, tokens, target, H)
    # Tolerance loosened slightly because softmax normalization uses the
    # approximate EUP reciprocal inside the attention kernel.
    assert logits.shape == (B, T, VOCAB) and loss.shape == (B, T)
    assert jnp.allclose(logits, logits_ref, atol=2e-2, rtol=2e-2), "logits mismatch"
    assert jnp.allclose(loss, loss_ref, atol=2e-2, rtol=2e-2), "loss mismatch"

    print("KERNEL_OK")
</pallas_src>

<mosaic_0001>
module attributes {stable_mosaic.version = 11 : i64} {
  func.func @_layernorm_kernel(%arg0: i32, %arg1: memref<16x32xf32, #tpu.memory_space<vmem>>, %arg2: memref<1x32xf32, #tpu.memory_space<vmem>>, %arg3: memref<1x32xf32, #tpu.memory_space<vmem>>, %arg4: memref<16x32xf32, #tpu.memory_space<vmem>>) attributes {dimension_semantics = [#tpu.dimension_semantics<parallel>], iteration_bounds = array<i64: 1>, scalar_prefetch = 0 : i64, scratch_operands = 0 : i64, tpu.core_type = #tpu.core_type<tc>, window_params = [{transform_indices = @transform_0, window_bounds = array<i64: 16, 32>}, {pipeline_mode = #tpu.pipeline_mode<synchronous>, transform_indices = @transform_1, window_bounds = array<i64: 1, 32>}, {pipeline_mode = #tpu.pipeline_mode<synchronous>, transform_indices = @transform_2, window_bounds = array<i64: 1, 32>}, {transform_indices = @transform_3, window_bounds = array<i64: 16, 32>}]} {
    %c0 = arith.constant 0 : index
    %c0_0 = arith.constant 0 : index
    %0 = vector.load %arg1[%c0, %c0_0] : memref<16x32xf32, #tpu.memory_space<vmem>>, vector<16x32xf32>
    %cst = arith.constant dense<0.000000e+00> : vector<16xf32>
    %1 = vector.multi_reduction <add>, %0, %cst [1] : vector<16x32xf32> to vector<16xf32>
    %2 = vector.shape_cast %1 : vector<16xf32> to vector<16x1xf32>
    %cst_1 = arith.constant 3.200000e+01 : f32
    %3 = vector.broadcast %cst_1 : f32 to vector<16x1xf32>
    %4 = arith.divf %2, %3 : vector<16x1xf32>
    %5 = vector.broadcast %4 : vector<16x1xf32> to vector<16x32xf32>
    %6 = arith.subf %0, %5 : vector<16x32xf32>
    %7 = arith.mulf %6, %6 : vector<16x32xf32>
    %cst_2 = arith.constant dense<0.000000e+00> : vector<16xf32>
    %8 = vector.multi_reduction <add>, %7, %cst_2 [1] : vector<16x32xf32> to vector<16xf32>
    %9 = vector.shape_cast %8 : vector<16xf32> to vector<16x1xf32>
    %cst_3 = arith.constant 3.200000e+01 : f32
    %10 = vector.broadcast %cst_3 : f32 to vector<16x1xf32>
    %11 = arith.divf %9, %10 : vector<16x1xf32>
    %cst_4 = arith.constant 9.99999974E-6 : f32
    %12 = vector.broadcast %cst_4 : f32 to vector<16x1xf32>
    %13 = arith.addf %11, %12 : vector<16x1xf32>
    %14 = math.rsqrt %13 : vector<16x1xf32>
    %15 = vector.broadcast %14 : vector<16x1xf32> to vector<16x32xf32>
    %16 = arith.mulf %6, %15 : vector<16x32xf32>
    %c0_5 = arith.constant 0 : index
    %c0_6 = arith.constant 0 : index
    %17 = vector.load %arg2[%c0_5, %c0_6] : memref<1x32xf32, #tpu.memory_space<vmem>>, vector<1x32xf32>
    %18 = vector.broadcast %17 : vector<1x32xf32> to vector<16x32xf32>
    %19 = arith.mulf %16, %18 : vector<16x32xf32>
    %c0_7 = arith.constant 0 : index
    %c0_8 = arith.constant 0 : index
    %20 = vector.load %arg3[%c0_7, %c0_8] : memref<1x32xf32, #tpu.memory_space<vmem>>, vector<1x32xf32>
    %21 = vector.broadcast %20 : vector<1x32xf32> to vector<16x32xf32>
    %22 = arith.addf %19, %21 : vector<16x32xf32>
    %c0_9 = arith.constant 0 : index
    %c0_10 = arith.constant 0 : index
    %23 = vector.load %arg4[%c0_9, %c0_10] : memref<16x32xf32, #tpu.memory_space<vmem>>, vector<16x32xf32>
    tpu.vector_store %arg4[%c0_9, %c0_10], %22 {strides = array<i32>} : memref<16x32xf32, #tpu.memory_space<vmem>>, vector<16x32xf32>,
    return
  }
  func.func @transform_0(%arg0: i32) -> (i32, i32) {
    %c0_i32 = arith.constant 0 : i32
    %c0_i32_0 = arith.constant 0 : i32
    return %arg0, %c0_i32 : i32, i32
  }
  func.func @transform_1(%arg0: i32) -> (i32, i32) {
    %c0_i32 = arith.constant 0 : i32
    %c0_i32_0 = arith.constant 0 : i32
    %c0_i32_1 = arith.constant 0 : i32
    return %c0_i32, %c0_i32_0 : i32, i32
  }
  func.func @transform_2(%arg0: i32) -> (i32, i32) {
    %c0_i32 = arith.constant 0 : i32
    %c0_i32_0 = arith.constant 0 : i32
    %c0_i32_1 = arith.constant 0 : i32
    return %c0_i32, %c0_i32_0 : i32, i32
  }
  func.func @transform_3(%arg0: i32) -> (i32, i32) {
    %c0_i32 = arith.constant 0 : i32
    %c0_i32_0 = arith.constant 0 : i32
    return %arg0, %c0_i32 : i32, i32
  }
}

</mosaic_0001>

<bundles_post_ra>
// kernel: tpu_custom_call.1
= control target key start
LH: loop header
LB: loop body
LE: loop exit
PB: predicated region body
PF: predicated region fallthrough
CT: control target
= control target key end

     0   :  { %8 = vsyncpa [#allocation3], 0  ;;  %s220_s0 = inlined_call_operand.hbm [shape: f32[16,32], index: 0, kind: input, shape index: {}]   ;;  %s221_s1 = inlined_call_operand.vmem [shape: f32[1,32], index: 1, kind: input, shape index: {}]   ;;  %s222_s2 = inlined_call_operand.vmem [shape: f32[1,32], index: 2, kind: input, shape index: {}]   ;;  %s223_s3 = inlined_call_operand.hbm [shape: f32[16,32], index: 3, kind: output, shape index: {}]  }
   0x1   :  { %9 = vsyncpa [#allocation4], 0  ;;  %s154_s12 = smov [#allocation2]   ;;  %s106_s16 = scalar_lea.hbm %s220_s0, 256 }
   0x2   :  { %s15_s13 = sshll.u32 %s154_s12, 4  ;;  %p107_p0 = scmp.ne.s32.totalorder %s220_s0, %s106_s16  ;;  %s16_s13 = int_to_ptr.vmem [resolvable:$true] %s15_s13 }
   0x3   :  { %p110_p1 = scmp.lt.u32.totalorder %s106_s16, %s220_s0 }
   0x5   :  { %p112_p2 = pnand %p110_p1, %p107_p0 }
   0x7   :  { %115 = shalt.err (!%p112_p2)
}
   0x8   :  { %s116_s21 = scalar_lea.vmem %s16_s13, 256  ;;  %p121_p4 = scmp.lt.s32.totalorder %s16_s13, %s16_s13 }
   0x9   :  { %p117_p3 = scmp.ne.s32.totalorder %s16_s13, %s116_s21  ;;  %p122_p5 = scmp.lt.s32.totalorder %s116_s21, %s116_s21 }
   0xb   :  { %p123_p6 = por %p122_p5, %p121_p4 }
   0xd   :  { %p124_p7 = pnand %p123_p6, %p117_p3 }
   0xf   :  { %127 = shalt.err (!%p124_p7)
}
  0x10   :  { %s155_s22 = smov 128   ;;  %s156_s23 = smov 8  }
  0x11   :  { %21 = dma.hbm_to_vmem [thread:$0]  %s220_s0, 256, %s16_s13, [#allocation3], %s155_s22, %s155_s22, %s156_s23  }
  0x12   :  { %150 = dma.done.wait [#allocation3], 256  }
  0x13   :  { %151 = vsyncadd [#allocation3], 4294967040  ;;  %vm31_vm0 = vcmask 261120   ;;  %v29_v0 = vld [vmem:[#allocation2] sm:$0xff]  ;;  %v30_v1 = vld [vmem:[#allocation2 + $0x8] sm:$0xff]  ;;  %s157_s29 = smov [#allocation5]  }
  0x14   :  { %v32_v2 = vsel %vm31_vm0, %v29_v0, 0.0  ;;  %v35_v3 = vsel %vm31_vm0, %v30_v1, 0.0  ;;  %v96_v21 = vld [vmem:[%s221_s1] ss:$0 sm:$0xff]  ;;  %s84_s30 = sshll.u32 %s157_s29, 4  ;;  %s85_s30 = int_to_ptr.vmem [resolvable:$true] %s84_s30 }
  0x15   :  { %33 = vadd.xlane.f32.xlu0 %v32_v2  ;;  %v97_v23 = vld [vmem:[%s222_s2] ss:$0 sm:$0xff]  ;;  %s128_s4 = scalar_lea.vmem %s85_s30, 256  ;;  %p133_p9 = scmp.lt.s32.totalorder %s85_s30, %s85_s30 }
  0x16   :  { %p129_p8 = scmp.ne.s32.totalorder %s85_s30, %s128_s4  ;;  %p134_p10 = scmp.lt.s32.totalorder %s128_s4, %s128_s4 }
  0x18   :  { %p135_p11 = por %p134_p10, %p133_p9 }
  0x19   :  { %36 = vadd.xlane.f32.xlu0 %v35_v3 }
  0x1a   :  { %p136_p12 = pnand %p135_p11, %p129_p8 }
  0xa2   :  { %v34_v4 = vpop.xlane.xlu0 %33 }
  0xa3   :  { %v39_v5 = vmul.f32 0.03125, %v34_v4 }
  0xa5   :  { %v41_v6 = vsub.f32 %v29_v0, %v39_v5 }
  0xa6   :  { %v37_v7 = vpop.xlane.xlu0 %36 }
  0xa7   :  { %v40_v8 = vmul.f32 0.03125, %v37_v7  ;;  %v43_v9 = vmul.f32 %v41_v6, %v41_v6 }
  0xa9   :  { %v42_v10 = vsub.f32 %v30_v1, %v40_v8  ;;  %v45_v11 = vsel %vm31_vm0, %v43_v9, 0.0 }
  0xaa   :  { %46 = vadd.xlane.f32.xlu1 %v45_v11 }
  0xab   :  { %v44_v12 = vmul.f32 %v42_v10, %v42_v10 }
  0xad   :  { %v48_v13 = vsel %vm31_vm0, %v44_v12, 0.0 }
  0xae   :  { %49 = vadd.xlane.f32.xlu1 %v48_v13 }
 0x137   :  { %v47_v14 = vpop.xlane.xlu1 %46 }
 0x138   :  { %v51_v15 = vmul.f32 0.03125, %v47_v14 }
 0x13a   :  { %v53_v16 = vadd.f32 1e-05, %v51_v15 }
 0x13b   :  { %v50_v17 = vpop.xlane.xlu1 %49 }
 0x13c   :  { %102 = vrsqrt.f32 %v53_v16  ;;  %v52_v18 = vmul.f32 0.03125, %v50_v17 }
 0x13e   :  { %v54_v19 = vadd.f32 1e-05, %v52_v18 }
 0x140   :  { %104 = vrsqrt.f32 %v54_v19 }
 0x146   :  { %v103_v20 = vpop.eup %102 }
 0x147   :  { %v57_v22 = vmul.f32 %v103_v20, %v41_v6 }
 0x149   :  { %v66_v24 = vmul.f32 %v96_v21, %v57_v22 }
 0x14a   :  { %v105_v25 = vpop.eup %104 }
 0x14b   :  { %v58_v26 = vmul.f32 %v105_v25, %v42_v10  ;;  %v75_v27 = vadd.f32 %v97_v23, %v66_v24 }
 0x14d   :  { %v67_v28 = vmul.f32 %v96_v21, %v58_v26  ;;  %77 = vst.msk [vmem:[#allocation5] sm:$0xff] %vm31_vm0, %v75_v27 }
 0x14f   :  { %v76_v29 = vadd.f32 %v97_v23, %v67_v28 }
 0x151   :  { %78 = vst.msk [vmem:[#allocation5 + $0x8] sm:$0xff] %vm31_vm0, %v76_v29 }
 0x152   :  { %139 = shalt.err (!%p136_p12)
}
 0x153   :  { %s140_s5 = scalar_lea.hbm %s223_s3, 256 }
 0x154   :  { %p141_p13 = scmp.ne.s32.totalorder %s223_s3, %s140_s5  ;;  %p144_p0 = scmp.lt.u32.totalorder %s140_s5, %s223_s3 }
 0x156   :  { %p146_p1 = pnand %p144_p0, %p141_p13 }
 0x158   :  { %149 = shalt.err (!%p146_p1)
}
 0x159   :  { %90 = dma.vmem_to_hbm [thread:$0]  %s85_s30, 256, %s223_s3, [#allocation4], %s155_s22, %s155_s22, %s156_s23  }
 0x15a   :  { %152 = dma.done.wait [#allocation4], 256  }
 0x15b   :  { %153 = vsyncadd [#allocation4], 4294967040 }
 0x15c   :  { %94 = vsyncpa [#allocation3], 1 }
 0x15d   :  { %95 = vsyncpa [#allocation4], 1 }

</bundles_post_ra>
